<compile_context>
chip_gen: v5e
topology: v5e:2x2
jax: 0.10.0
libtpu: 0.0.40
codegen_flags: <defaults>
</compile_context>

<pallas_src>
import math

import jax
import jax.numpy as jnp
from jax import lax
from jax.experimental import pallas as pl
from jax.experimental.pallas import tpu as pltpu


# Per-accumulator element cap: 8192 f32 elems = 8 vregs, so the two complex
# accumulators together use <= 16 vregs and leave headroom for unrolled w loads.
_ACC_ELEMS = 8192


# ----------------------------------------------------------------------------
# GaborConv2d.forward() equivalent (pure JAX glue: tiny parameter-generated grid)
# ----------------------------------------------------------------------------
def gabor_weight(grid_size, freq, theta, sigma, gamma):
    lin = jnp.linspace(-0.5, 0.5, grid_size)
    # torch.meshgrid default is 'ij' indexing; y varies along rows, x along cols.
    y, x = jnp.meshgrid(lin, lin, indexing="ij")
    sigma_x = sigma
    sigma_y = sigma / (gamma + 1e-5)
    u = x * jnp.cos(theta) + y * jnp.sin(theta)
    v = -x * jnp.sin(theta) + y * jnp.cos(theta)
    test1 = sigma_x ** 2 * (u - freq / math.pi) ** 2
    test2 = sigma_y ** 2 * v ** 2
    return jnp.exp(-2.0 * math.pi ** 2 * (test1 + test2))


# ----------------------------------------------------------------------------
# Pallas kernel: complex contraction over input channels (Gabor already folded
# into the weights in the wrapper).
#   out[o, m] = sum_i x[i, m] * w[i, o, m]   (complex, per batch b / Cout tile j)
# ----------------------------------------------------------------------------
def _compl_mul_kernel(xr_ref, xi_ref, wr_ref, wi_ref, or_ref, oi_ref):
    cin = wr_ref.shape[0]
    t_cout, mp = or_ref.shape

    # Chunk the lane (flattened-mode) axis so register accumulators stay small.
    n128 = mp // 128
    max_units = max(1, _ACC_ELEMS // (t_cout * 128))
    units = 1
    for d in range(1, n128 + 1):
        if n128 % d == 0 and d <= max_units:
            units = d
    chunk = units * 128
    n_chunks = n128 // units
    unroll = min(cin, 4 if t_cout * chunk <= _ACC_ELEMS else 2)

    # Static Python loop over chunks; each chunk's fori_loop bounds its own
    # accumulator live range, so chunks never keep two accumulator sets alive.
    for c in range(n_chunks):
        if n_chunks == 1:
            col = slice(None)
            xr_c, xi_c, wr_c, wi_c = xr_ref, xi_ref, wr_ref, wi_ref
        else:
            col = pl.ds(c * chunk, chunk)          # static, 128-aligned
            xr_c = xr_ref.at[:, col]
            xi_c = xi_ref.at[:, col]
            wr_c = wr_ref.at[:, :, col]
            wi_c = wi_ref.at[:, :, col]

        def body(i, carry, xr_c=xr_c, xi_c=xi_c, wr_c=wr_c, wi_c=wi_c):
            acc_r, acc_i = carry
            # One explicit broadcast per operand, reused by both multiplies.
            xr_i = jnp.broadcast_to(xr_c[pl.ds(i, 1), :], (t_cout, chunk))
            xi_i = jnp.broadcast_to(xi_c[pl.ds(i, 1), :], (t_cout, chunk))
            wr_i = wr_c[i]                         # (t_cout, chunk)
            wi_i = wi_c[i]                         # (t_cout, chunk)
            acc_r = acc_r + (xr_i * wr_i - xi_i * wi_i)
            acc_i = acc_i + (xr_i * wi_i + xi_i * wr_i)
            return acc_r, acc_i

        zero = jnp.zeros((t_cout, chunk), jnp.float32)
        acc_r, acc_i = lax.fori_loop(0, cin, body, (zero, zero), unroll=unroll)

        or_ref[:, col] = acc_r.astype(or_ref.dtype)
        oi_ref[:, col] = acc_i.astype(oi_ref.dtype)


# ----------------------------------------------------------------------------
# VMEM planning (generation-aware)
# ----------------------------------------------------------------------------
def _vmem_capacity_bytes():
    try:
        info = pltpu.get_tpu_info()
        cap = getattr(info, "vmem_capacity_bytes", None)
        if cap:
            return int(cap)
    except Exception:
        pass
    return 64 * 1024 * 1024        # conservative default (v7x per-TensorCore)


def _vmem_need_bytes(cin, t_cout, mp):
    # Double-buffered f32 blocks: xr+xi, wr+wi, out_r+out_i.
    return 16 * mp * (cin + cin * t_cout + t_cout)


def _plan_cout_tile(cin, cout, mp, budget_bytes):
    if cout % 8 != 0:
        return cout                                 # block == full dim -> layout OK
    cands = [t for t in range(min(cout, 64), 0, -8) if cout % t == 0]
    for t in cands:
        if _vmem_need_bytes(cin, t, mp) <= budget_bytes:
            return t
    return cands[-1]                                # smallest multiple-of-8 divisor


# ----------------------------------------------------------------------------
# Pallas wrapper
# ----------------------------------------------------------------------------
def _compl_mul_pallas(xr, xi, wr_pad, wi_pad):
    """xr, xi: (B, Cin, M) f32 (unpadded fused modes).
    wr_pad, wi_pad: (Cin, Cout, Mp) f32, Gabor premultiplied, lane-padded (Mp % 128 == 0).
    Returns (out_r, out_i): (B, Cout, M) f32."""
    B, Cin, M = xr.shape
    Cout, Mp = wr_pad.shape[1], wr_pad.shape[2]

    pad = Mp - M
    if pad:
        xr = jnp.pad(xr, ((0, 0), (0, 0), (0, pad)))
        xi = jnp.pad(xi, ((0, 0), (0, 0), (0, pad)))

    cap = _vmem_capacity_bytes()
    t_cout = _plan_cout_tile(Cin, Cout, Mp, int(0.75 * cap))
    n_j = Cout // t_cout
    need = _vmem_need_bytes(Cin, t_cout, Mp)
    vmem_limit = int(min(need + (8 << 20), int(0.92 * cap)))

    flops = 8 * B * Cin * Cout * Mp
    bytes_accessed = 4 * (2 * B * Cin * Mp * n_j      # x re-read once per Cout tile
                          + 2 * Cin * Cout * Mp       # weights read exactly once
                          + 2 * B * Cout * Mp)        # outputs written once
    cost = pl.CostEstimate(flops=flops, transcendentals=0,
                           bytes_accessed=bytes_accessed)

    # Cout-tile axis outer/slow so the weight block index is constant across the
    # inner batch sweep (Pallas elides the weight copy); batch is "arbitrary".
    if n_j > 1:
        dims = ("parallel", "arbitrary")
    else:
        dims = ("arbitrary", "parallel")              # keep megacore busy via batch

    out_r, out_i = pl.pallas_call(
        _compl_mul_kernel,
        out_shape=[
            jax.ShapeDtypeStruct((B, Cout, Mp), jnp.float32),
            jax.ShapeDtypeStruct((B, Cout, Mp), jnp.float32),
        ],
        grid=(n_j, B),
        in_specs=[
            pl.BlockSpec((None, Cin, Mp), lambda j, b: (b, 0, 0)),     # xr -> (Cin, Mp)
            pl.BlockSpec((None, Cin, Mp), lambda j, b: (b, 0, 0)),     # xi
            pl.BlockSpec((Cin, t_cout, Mp), lambda j, b: (0, j, 0)),   # wr (resident over b)
            pl.BlockSpec((Cin, t_cout, Mp), lambda j, b: (0, j, 0)),   # wi
        ],
        out_specs=[
            pl.BlockSpec((None, t_cout, Mp), lambda j, b: (b, j, 0)),  # out_r -> (TCout, Mp)
            pl.BlockSpec((None, t_cout, Mp), lambda j, b: (b, j, 0)),  # out_i
        ],
        compiler_params=pltpu.CompilerParams(
            dimension_semantics=dims,
            vmem_limit_bytes=vmem_limit,
        ),
        cost_estimate=cost,
    )(xr, xi, wr_pad, wi_pad)

    return out_r[:, :, :M], out_i[:, :, :M]


# ----------------------------------------------------------------------------
# Weight preparation (hoisted: do once per parameter update, not per forward)
# ----------------------------------------------------------------------------
def prepare_spectral_weights(w1r, w1i, w2r, w2i, gabor_params, modes1, modes2,
                             grid_size):
    """Fold the (batch-invariant) ifftshifted Gabor window into the weights, fuse
    the two corner-mode slabs along a flattened mode axis, and lane-pad it to a
    multiple of 128 so kernel stores are full-width vst."""
    Cin, Cout = w1r.shape[0], w1r.shape[1]
    m1, m2 = modes1, modes2
    M = 2 * m1 * m2
    Mp = max(128, ((M + 127) // 128) * 128)

    freq, theta, sigma, gamma = gabor_params
    gabor = jnp.fft.ifftshift(gabor_weight(grid_size, freq, theta, sigma, gamma))
    g1 = gabor[:m1, :m2][None, None]
    g2 = gabor[-m1:, :m2][None, None]

    wr = jnp.concatenate(
        [(w1r * g1).reshape(Cin, Cout, m1 * m2),
         (w2r * g2).reshape(Cin, Cout, m1 * m2)], axis=-1).astype(jnp.float32)
    wi = jnp.concatenate(
        [(w1i * g1).reshape(Cin, Cout, m1 * m2),
         (w2i * g2).reshape(Cin, Cout, m1 * m2)], axis=-1).astype(jnp.float32)

    pad = Mp - M
    if pad:
        wr = jnp.pad(wr, ((0, 0), (0, 0), (0, pad)))
        wi = jnp.pad(wi, ((0, 0), (0, 0), (0, pad)))
    return wr, wi


# ----------------------------------------------------------------------------
# Full forward pass of SpectralConv2d_fast
# ----------------------------------------------------------------------------
def spectral_conv2d_fast(x, w1r, w1i, w2r, w2i, gabor_params, modes1, modes2,
                         prepared=None):
    B, Cin, H, W = x.shape
    Cout = w1r.shape[1]
    m1, m2 = modes1, modes2
    M = m1 * m2

    if prepared is None:
        # Gabor window built on an (H, H) grid (s + len - 1 == H in the original
        # script), then ifftshifted — matches the PyTorch module for square inputs.
        prepared = prepare_spectral_weights(w1r, w1i, w2r, w2i, gabor_params,
                                            m1, m2, H)
    wr_pad, wi_pad = prepared

    # TODO(synk): rfft2 / irfft2 have no Pallas primitive on TPU; done with jnp.fft glue.
    x_ft = jnp.fft.rfft2(x)                      # (B, Cin, H, W//2 + 1) complex64

    xs1 = x_ft[:, :, :m1, :m2]
    xs2 = x_ft[:, :, -m1:, :m2]
    xr = jnp.concatenate(
        [jnp.real(xs1).reshape(B, Cin, M), jnp.real(xs2).reshape(B, Cin, M)],
        axis=-1).astype(jnp.float32)
    xi = jnp.concatenate(
        [jnp.imag(xs1).reshape(B, Cin, M), jnp.imag(xs2).reshape(B, Cin, M)],
        axis=-1).astype(jnp.float32)

    out_r, out_i = _compl_mul_pallas(xr, xi, wr_pad, wi_pad)

    o1 = (out_r[:, :, :M] + 1j * out_i[:, :, :M]).reshape(B, Cout, m1, m2)
    o2 = (out_r[:, :, M:2 * M] + 1j * out_i[:, :, M:2 * M]).reshape(B, Cout, m1, m2)

    out_ft = jnp.zeros((B, Cout, H, W // 2 + 1), dtype=jnp.complex64)
    out_ft = out_ft.at[:, :, :m1, :m2].set(o1)
    out_ft = out_ft.at[:, :, -m1:, :m2].set(o2)   # same overwrite semantics as torch

    return jnp.fft.irfft2(out_ft, s=(H, W))


# ----------------------------------------------------------------------------
# Pure-JAX reference (for correctness check only)
# ----------------------------------------------------------------------------
def _reference(x, w1r, w1i, w2r, w2i, gabor_params, modes1, modes2):
    B, Cin, H, W = x.shape
    Cout = w1r.shape[1]
    freq, theta, sigma, gamma = gabor_params
    gabor = jnp.fft.ifftshift(gabor_weight(H, freq, theta, sigma, gamma))
    g1 = gabor[:modes1, :modes2][None, None]
    g2 = gabor[-modes1:, :modes2][None, None]
    w1 = (w1r + 1j * w1i) * g1
    w2 = (w2r + 1j * w2i) * g2
    x_ft = jnp.fft.rfft2(x)
    out_ft = jnp.zeros((B, Cout, H, W // 2 + 1), dtype=jnp.complex64)
    out_ft = out_ft.at[:, :, :modes1, :modes2].set(
        jnp.einsum("bixy,ioxy->boxy", x_ft[:, :, :modes1, :modes2], w1))
    out_ft = out_ft.at[:, :, -modes1:, :modes2].set(
        jnp.einsum("bixy,ioxy->boxy", x_ft[:, :, -modes1:, :modes2], w2))
    return jnp.fft.irfft2(out_ft, s=(H, W))


if __name__ == "__main__":
    # Small shapes consistent with the module:
    B, Cin, Cout, H, W = 2, 4, 4, 16, 16
    modes1, modes2 = 4, 4

    key = jax.random.PRNGKey(0)
    k1, k2, k3, k4, kx = jax.random.split(key, 5)
    scale = 1.0 / (Cin * Cout)

    # weights1, weights2: complex (Cin, Cout, modes1, modes2); torch.rand(cfloat)
    # draws real and imag parts uniformly in [0, 1).
    w1r = scale * jax.random.uniform(k1, (Cin, Cout, modes1, modes2), jnp.float32)
    w1i = scale * jax.random.uniform(k2, (Cin, Cout, modes1, modes2), jnp.float32)
    w2r = scale * jax.random.uniform(k3, (Cin, Cout, modes1, modes2), jnp.float32)
    w2i = scale * jax.random.uniform(k4, (Cin, Cout, modes1, modes2), jnp.float32)

    # Gabor parameters (init values from GaborConv2d.__init__). weights3 is unused
    # in the forward pass, so it is omitted.
    gabor_params = (jnp.float32(1.1107), jnp.float32(0.39),
                    jnp.float32(2.82), jnp.float32(1.0))

    x = jax.random.normal(kx, (B, Cin, H, W), jnp.float32)

    # Prepare (Gabor-fold + fuse + pad) the weights once; reuse across forward calls.
    prepared = prepare_spectral_weights(w1r, w1i, w2r, w2i, gabor_params,
                                        modes1, modes2, H)
    prepared = jax.block_until_ready(prepared)

    out = spectral_conv2d_fast(x, w1r, w1i, w2r, w2i, gabor_params,
                               modes1, modes2, prepared=prepared)
    out = jax.block_until_ready(out)

    ref = jax.block_until_ready(
        _reference(x, w1r, w1i, w2r, w2i, gabor_params, modes1, modes2))

    assert out.shape == (B, Cout, H, W), out.shape
    assert jnp.allclose(out, ref, atol=1e-4, rtol=1e-4), float(jnp.max(jnp.abs(out - ref)))
    print("KERNEL_OK")
</pallas_src>

<mosaic_0001>
module attributes {stable_mosaic.version = 11 : i64} {
  func.func @_compl_mul_kernel(%arg0: i32, %arg1: i32, %arg2: memref<1x4x128xf32, #tpu.memory_space<vmem>>, %arg3: memref<1x4x128xf32, #tpu.memory_space<vmem>>, %arg4: memref<4x4x128xf32, #tpu.memory_space<vmem>>, %arg5: memref<4x4x128xf32, #tpu.memory_space<vmem>>, %arg6: memref<1x4x128xf32, #tpu.memory_space<vmem>>, %arg7: memref<1x4x128xf32, #tpu.memory_space<vmem>>) attributes {dimension_semantics = [#tpu.dimension_semantics<arbitrary>, #tpu.dimension_semantics<parallel>], iteration_bounds = array<i64: 1, 2>, scalar_prefetch = 0 : i64, scratch_operands = 0 : i64, tpu.core_type = #tpu.core_type<tc>, window_params = [{transform_indices = @transform_0, window_bounds = array<i64: 1, 4, 128>}, {transform_indices = @transform_1, window_bounds = array<i64: 1, 4, 128>}, {transform_indices = @transform_2, window_bounds = array<i64: 4, 4, 128>}, {transform_indices = @transform_3, window_bounds = array<i64: 4, 4, 128>}, {transform_indices = @transform_4, window_bounds = array<i64: 1, 4, 128>}, {transform_indices = @transform_5, window_bounds = array<i64: 1, 4, 128>}]} {
    %cst = arith.constant 0.000000e+00 : f32
    %0 = vector.broadcast %cst : f32 to vector<4x128xf32>
    %c0_i32 = arith.constant 0 : i32
    %c0 = arith.constant 0 : index
    %1 = arith.index_cast %c0_i32 : i32 to index
    %c0_0 = arith.constant 0 : index
    %2 = vector.load %arg2[%c0, %1, %c0_0] : memref<1x4x128xf32, #tpu.memory_space<vmem>>, vector<1x1x128xf32>
    %3 = vector.shape_cast %2 : vector<1x1x128xf32> to vector<1x128xf32>
    %4 = vector.shape_cast %3 : vector<1x128xf32> to vector<1x128xf32>
    %5 = vector.broadcast %4 : vector<1x128xf32> to vector<4x128xf32>
    %c0_1 = arith.constant 0 : index
    %6 = arith.index_cast %c0_i32 : i32 to index
    %c0_2 = arith.constant 0 : index
    %7 = vector.load %arg3[%c0_1, %6, %c0_2] : memref<1x4x128xf32, #tpu.memory_space<vmem>>, vector<1x1x128xf32>
    %8 = vector.shape_cast %7 : vector<1x1x128xf32> to vector<1x128xf32>
    %9 = vector.shape_cast %8 : vector<1x128xf32> to vector<1x128xf32>
    %10 = vector.broadcast %9 : vector<1x128xf32> to vector<4x128xf32>
    %11 = arith.index_cast %c0_i32 : i32 to index
    %c0_3 = arith.constant 0 : index
    %c0_4 = arith.constant 0 : index
    %12 = vector.load %arg4[%11, %c0_3, %c0_4] : memref<4x4x128xf32, #tpu.memory_space<vmem>>, vector<1x4x128xf32>
    %13 = vector.shape_cast %12 : vector<1x4x128xf32> to vector<4x128xf32>
    %14 = arith.index_cast %c0_i32 : i32 to index
    %c0_5 = arith.constant 0 : index
    %c0_6 = arith.constant 0 : index
    %15 = vector.load %arg5[%14, %c0_5, %c0_6] : memref<4x4x128xf32, #tpu.memory_space<vmem>>, vector<1x4x128xf32>
    %16 = vector.shape_cast %15 : vector<1x4x128xf32> to vector<4x128xf32>
    %17 = arith.mulf %5, %13 : vector<4x128xf32>
    %18 = arith.mulf %10, %16 : vector<4x128xf32>
    %19 = arith.subf %17, %18 : vector<4x128xf32>
    %20 = arith.addf %0, %19 : vector<4x128xf32>
    %21 = arith.mulf %5, %16 : vector<4x128xf32>
    %22 = arith.mulf %10, %13 : vector<4x128xf32>
    %23 = arith.addf %21, %22 : vector<4x128xf32>
    %24 = arith.addf %0, %23 : vector<4x128xf32>
    %c1_i32 = arith.constant 1 : i32
    %c0_7 = arith.constant 0 : index
    %25 = arith.index_cast %c1_i32 : i32 to index
    %c0_8 = arith.constant 0 : index
    %26 = vector.load %arg2[%c0_7, %25, %c0_8] : memref<1x4x128xf32, #tpu.memory_space<vmem>>, vector<1x1x128xf32>
    %27 = vector.shape_cast %26 : vector<1x1x128xf32> to vector<1x128xf32>
    %28 = vector.shape_cast %27 : vector<1x128xf32> to vector<1x128xf32>
    %29 = vector.broadcast %28 : vector<1x128xf32> to vector<4x128xf32>
    %c0_9 = arith.constant 0 : index
    %30 = arith.index_cast %c1_i32 : i32 to index
    %c0_10 = arith.constant 0 : index
    %31 = vector.load %arg3[%c0_9, %30, %c0_10] : memref<1x4x128xf32, #tpu.memory_space<vmem>>, vector<1x1x128xf32>
    %32 = vector.shape_cast %31 : vector<1x1x128xf32> to vector<1x128xf32>
    %33 = vector.shape_cast %32 : vector<1x128xf32> to vector<1x128xf32>
    %34 = vector.broadcast %33 : vector<1x128xf32> to vector<4x128xf32>
    %35 = arith.index_cast %c1_i32 : i32 to index
    %c0_11 = arith.constant 0 : index
    %c0_12 = arith.constant 0 : index
    %36 = vector.load %arg4[%35, %c0_11, %c0_12] : memref<4x4x128xf32, #tpu.memory_space<vmem>>, vector<1x4x128xf32>
    %37 = vector.shape_cast %36 : vector<1x4x128xf32> to vector<4x128xf32>
    %38 = arith.index_cast %c1_i32 : i32 to index
    %c0_13 = arith.constant 0 : index
    %c0_14 = arith.constant 0 : index
    %39 = vector.load %arg5[%38, %c0_13, %c0_14] : memref<4x4x128xf32, #tpu.memory_space<vmem>>, vector<1x4x128xf32>
    %40 = vector.shape_cast %39 : vector<1x4x128xf32> to vector<4x128xf32>
    %41 = arith.mulf %29, %37 : vector<4x128xf32>
    %42 = arith.mulf %34, %40 : vector<4x128xf32>
    %43 = arith.subf %41, %42 : vector<4x128xf32>
    %44 = arith.addf %20, %43 : vector<4x128xf32>
    %45 = arith.mulf %29, %40 : vector<4x128xf32>
    %46 = arith.mulf %34, %37 : vector<4x128xf32>
    %47 = arith.addf %45, %46 : vector<4x128xf32>
    %48 = arith.addf %24, %47 : vector<4x128xf32>
    %c2_i32 = arith.constant 2 : i32
    %c0_15 = arith.constant 0 : index
    %49 = arith.index_cast %c2_i32 : i32 to index
    %c0_16 = arith.constant 0 : index
    %50 = vector.load %arg2[%c0_15, %49, %c0_16] : memref<1x4x128xf32, #tpu.memory_space<vmem>>, vector<1x1x128xf32>
    %51 = vector.shape_cast %50 : vector<1x1x128xf32> to vector<1x128xf32>
    %52 = vector.shape_cast %51 : vector<1x128xf32> to vector<1x128xf32>
    %53 = vector.broadcast %52 : vector<1x128xf32> to vector<4x128xf32>
    %c0_17 = arith.constant 0 : index
    %54 = arith.index_cast %c2_i32 : i32 to index
    %c0_18 = arith.constant 0 : index
    %55 = vector.load %arg3[%c0_17, %54, %c0_18] : memref<1x4x128xf32, #tpu.memory_space<vmem>>, vector<1x1x128xf32>
    %56 = vector.shape_cast %55 : vector<1x1x128xf32> to vector<1x128xf32>
    %57 = vector.shape_cast %56 : vector<1x128xf32> to vector<1x128xf32>
    %58 = vector.broadcast %57 : vector<1x128xf32> to vector<4x128xf32>
    %59 = arith.index_cast %c2_i32 : i32 to index
    %c0_19 = arith.constant 0 : index
    %c0_20 = arith.constant 0 : index
    %60 = vector.load %arg4[%59, %c0_19, %c0_20] : memref<4x4x128xf32, #tpu.memory_space<vmem>>, vector<1x4x128xf32>
    %61 = vector.shape_cast %60 : vector<1x4x128xf32> to vector<4x128xf32>
    %62 = arith.index_cast %c2_i32 : i32 to index
    %c0_21 = arith.constant 0 : index
    %c0_22 = arith.constant 0 : index
    %63 = vector.load %arg5[%62, %c0_21, %c0_22] : memref<4x4x128xf32, #tpu.memory_space<vmem>>, vector<1x4x128xf32>
    %64 = vector.shape_cast %63 : vector<1x4x128xf32> to vector<4x128xf32>
    %65 = arith.mulf %53, %61 : vector<4x128xf32>
    %66 = arith.mulf %58, %64 : vector<4x128xf32>
    %67 = arith.subf %65, %66 : vector<4x128xf32>
    %68 = arith.addf %44, %67 : vector<4x128xf32>
    %69 = arith.mulf %53, %64 : vector<4x128xf32>
    %70 = arith.mulf %58, %61 : vector<4x128xf32>
    %71 = arith.addf %69, %70 : vector<4x128xf32>
    %72 = arith.addf %48, %71 : vector<4x128xf32>
    %c3_i32 = arith.constant 3 : i32
    %c0_23 = arith.constant 0 : index
    %73 = arith.index_cast %c3_i32 : i32 to index
    %c0_24 = arith.constant 0 : index
    %74 = vector.load %arg2[%c0_23, %73, %c0_24] : memref<1x4x128xf32, #tpu.memory_space<vmem>>, vector<1x1x128xf32>
    %75 = vector.shape_cast %74 : vector<1x1x128xf32> to vector<1x128xf32>
    %76 = vector.shape_cast %75 : vector<1x128xf32> to vector<1x128xf32>
    %77 = vector.broadcast %76 : vector<1x128xf32> to vector<4x128xf32>
    %c0_25 = arith.constant 0 : index
    %78 = arith.index_cast %c3_i32 : i32 to index
    %c0_26 = arith.constant 0 : index
    %79 = vector.load %arg3[%c0_25, %78, %c0_26] : memref<1x4x128xf32, #tpu.memory_space<vmem>>, vector<1x1x128xf32>
    %80 = vector.shape_cast %79 : vector<1x1x128xf32> to vector<1x128xf32>
    %81 = vector.shape_cast %80 : vector<1x128xf32> to vector<1x128xf32>
    %82 = vector.broadcast %81 : vector<1x128xf32> to vector<4x128xf32>
    %83 = arith.index_cast %c3_i32 : i32 to index
    %c0_27 = arith.constant 0 : index
    %c0_28 = arith.constant 0 : index
    %84 = vector.load %arg4[%83, %c0_27, %c0_28] : memref<4x4x128xf32, #tpu.memory_space<vmem>>, vector<1x4x128xf32>
    %85 = vector.shape_cast %84 : vector<1x4x128xf32> to vector<4x128xf32>
    %86 = arith.index_cast %c3_i32 : i32 to index
    %c0_29 = arith.constant 0 : index
    %c0_30 = arith.constant 0 : index
    %87 = vector.load %arg5[%86, %c0_29, %c0_30] : memref<4x4x128xf32, #tpu.memory_space<vmem>>, vector<1x4x128xf32>
    %88 = vector.shape_cast %87 : vector<1x4x128xf32> to vector<4x128xf32>
    %89 = arith.mulf %77, %85 : vector<4x128xf32>
    %90 = arith.mulf %82, %88 : vector<4x128xf32>
    %91 = arith.subf %89, %90 : vector<4x128xf32>
    %92 = arith.addf %68, %91 : vector<4x128xf32>
    %93 = arith.mulf %77, %88 : vector<4x128xf32>
    %94 = arith.mulf %82, %85 : vector<4x128xf32>
    %95 = arith.addf %93, %94 : vector<4x128xf32>
    %96 = arith.addf %72, %95 : vector<4x128xf32>
    %c4_i32 = arith.constant 4 : i32
    %c0_31 = arith.constant 0 : index
    %c0_32 = arith.constant 0 : index
    %c0_33 = arith.constant 0 : index
    %97 = vector.load %arg6[%c0_31, %c0_32, %c0_33] : memref<1x4x128xf32, #tpu.memory_space<vmem>>, vector<1x4x128xf32>
    %98 = vector.shape_cast %97 : vector<1x4x128xf32> to vector<4x128xf32>
    %99 = vector.shape_cast %92 : vector<4x128xf32> to vector<1x4x128xf32>
    tpu.vector_store %arg6[%c0_31, %c0_32, %c0_33], %99 {strides = array<i32>} : memref<1x4x128xf32, #tpu.memory_space<vmem>>, vector<1x4x128xf32>,
    %c0_34 = arith.constant 0 : index
    %c0_35 = arith.constant 0 : index
    %c0_36 = arith.constant 0 : index
    %100 = vector.load %arg7[%c0_34, %c0_35, %c0_36] : memref<1x4x128xf32, #tpu.memory_space<vmem>>, vector<1x4x128xf32>
    %101 = vector.shape_cast %100 : vector<1x4x128xf32> to vector<4x128xf32>
    %102 = vector.shape_cast %96 : vector<4x128xf32> to vector<1x4x128xf32>
    tpu.vector_store %arg7[%c0_34, %c0_35, %c0_36], %102 {strides = array<i32>} : memref<1x4x128xf32, #tpu.memory_space<vmem>>, vector<1x4x128xf32>,
    return
  }
  func.func @transform_0(%arg0: i32, %arg1: i32) -> (i32, i32, i32) {
    %c0_i32 = arith.constant 0 : i32
    %c0_i32_0 = arith.constant 0 : i32
    %c0_i32_1 = arith.constant 0 : i32
    return %arg1, %c0_i32, %c0_i32_0 : i32, i32, i32
  }
  func.func @transform_1(%arg0: i32, %arg1: i32) -> (i32, i32, i32) {
    %c0_i32 = arith.constant 0 : i32
    %c0_i32_0 = arith.constant 0 : i32
    %c0_i32_1 = arith.constant 0 : i32
    return %arg1, %c0_i32, %c0_i32_0 : i32, i32, i32
  }
  func.func @transform_2(%arg0: i32, %arg1: i32) -> (i32, i32, i32) {
    %c0_i32 = arith.constant 0 : i32
    %c0_i32_0 = arith.constant 0 : i32
    %c0_i32_1 = arith.constant 0 : i32
    return %c0_i32, %arg0, %c0_i32_0 : i32, i32, i32
  }
  func.func @transform_3(%arg0: i32, %arg1: i32) -> (i32, i32, i32) {
    %c0_i32 = arith.constant 0 : i32
    %c0_i32_0 = arith.constant 0 : i32
    %c0_i32_1 = arith.constant 0 : i32
    return %c0_i32, %arg0, %c0_i32_0 : i32, i32, i32
  }
  func.func @transform_4(%arg0: i32, %arg1: i32) -> (i32, i32, i32) {
    %c0_i32 = arith.constant 0 : i32
    %c0_i32_0 = arith.constant 0 : i32
    return %arg1, %arg0, %c0_i32 : i32, i32, i32
  }
  func.func @transform_5(%arg0: i32, %arg1: i32) -> (i32, i32, i32) {
    %c0_i32 = arith.constant 0 : i32
    %c0_i32_0 = arith.constant 0 : i32
    return %arg1, %arg0, %c0_i32 : i32, i32, i32
  }
}

</mosaic_0001>

<bundles_post_ra>
// kernel: tpu_custom_call.1
= control target key start
LH: loop header
LB: loop body
LE: loop exit
PB: predicated region body
PF: predicated region fallthrough
CT: control target
= control target key end

     0   :  { %s1230_s0 = inlined_call_operand.hbm [shape: f32[2,4,128], index: 0, kind: input, shape index: {}]   ;;  %s1231_s1 = inlined_call_operand.hbm [shape: f32[2,4,128], index: 1, kind: input, shape index: {}]   ;;  %s1232_s2 = inlined_call_operand.hbm [shape: f32[4,4,128], index: 2, kind: input, shape index: {}]   ;;  %s1233_s3 = inlined_call_operand.hbm [shape: f32[4,4,128], index: 3, kind: input, shape index: {}]   ;;  %s1234_s4 = inlined_call_operand.hbm [shape: f32[2,4,128], index: 4, kind: output, shape index: {0}]   ;;  %s1235_s5 = inlined_call_operand.hbm [shape: f32[2,4,128], index: 5, kind: output, shape index: {1}]  }
   0x1   :  { %1239 = sst [smem:[#allocation23_spill]] %s1232_s2 }
   0x2   :  { %1240 = sst [smem:[#allocation24_spill]] %s1233_s3 }
   0x3   :  { %11 = vsyncpa [#allocation3], 0 }
   0x4   :  { %13 = vsyncpa [#allocation3 + $0x1], 0 }
   0x5   :  { %14 = vsyncpa [#allocation6], 0 }
   0x6   :  { %16 = vsyncpa [#allocation6 + $0x1], 0 }
   0x7   :  { %17 = vsyncpa [#allocation9], 0 }
   0x8   :  { %18 = vsyncpa [#allocation4], 0 }
   0x9   :  { %20 = vsyncpa [#allocation4 + $0x1], 0 }
   0xa   :  { %21 = vsyncpa [#allocation12], 0 }
   0xb   :  { %23 = vsyncpa [#allocation12 + $0x1], 0  ;;  %s1023_s18 = smov 0   ;;  %s1025_s19 = smov 0  }
   0xc   :  { %s1027_s20 = smov 0   ;;  %s1029_s21 = smov 0  }
   0xd   :  { %s1031_s22 = smov 0   ;;  %s1033_s23 = smov 0  }
   0xe LB: > { %1241 = sst [smem:[#allocation19_spill]] %s975_s20  ;;  %s1054_s24 = sadd.s32 4294967295, %s987_s23   ;;  %s987_s23 = sphi %s1033_s23, %s29_s23   ;;  %s983_s22 = sphi %s1031_s22, %s1255_s22   ;;  %s979_s21 = sphi %s1029_s21, %s1254_s21   ;;  %s975_s20 = sphi %s1027_s20, %s1253_s20   ;;  %s971_s19 = sphi %s1025_s19, %s1257_s19   ;;  %s967_s18 = sphi %s1023_s18, %s1256_s18  }
   0xf   : > { %1242 = sst [smem:[#allocation20_spill]] %s983_s22  ;;  %p617_p0 = scmp.ge.s32.totalorder %s987_s23, 1 }
  0x10   : > { %p62_p1 = scmp.eq.s32.totalorder %s1054_s24, 0  ;;  %p206_p2 = scmp.lt.s32.totalorder %s987_s23, 3 }
  0x11   : > { %s1243_s2 = sld [smem:[#allocation23_spill]]  ;;  %s989_s29 = smov [#allocation7]  }
  0x12   : > { %p1062_p3 = pnand %p617_p0, %p206_p2  ;;  %s221_s30 = sshll.u32 %s989_s29, 4  ;;  %s222_s30 = int_to_ptr.vmem [resolvable:$true] %s221_s30 }
  0x13   : > { %p620_p6 = scmp.ge.s32.totalorder %s987_s23, 2  ;;  %s1245_s3 = sld [smem:[#allocation24_spill]] }
  0x14   : > { %p654_p4 = pneg %p1062_p3  ;;  %s990_s9 = smov 64  }
  0x15   : > { %s991_s10 = smov 4   ;;  %s992_s11 = smov [#allocation8]  }
  0x16   : > { %p655_p5 = pnand %p654_p4, %p62_p1  ;;  %s237_s12 = sshll.u32 %s992_s11, 4  ;;  %s238_s12 = int_to_ptr.vmem [resolvable:$true] %s237_s12 }
  0x17   : > { %s219_s27 = sshll.u32 %s1243_s2, 4  ;;  %s616_s13 = sadd.s32 4294967294, %s987_s23   ;;  %s220_s27 = int_to_ptr.hbm [resolvable:$true] %s219_s27 }
  0x18   : > { %657 = dma.hbm_to_vmem [thread:$0]  (!%p655_p5), %s220_s27, 256, %s222_s30, [#allocation6], %s990_s9, %s990_s9, %s991_s10  }
  0x19   : > { %s235_s8 = sshll.u32 %s1245_s3, 4  ;;  %s38_s14 = sadd.s32 1, %s983_s22  ;;  %s236_s8 = int_to_ptr.hbm [resolvable:$true] %s235_s8 }
  0x1a   : > { %660 = dma.hbm_to_vmem [thread:$0]  (!%p655_p5), %s236_s8, 256, %s238_s12, [#allocation9], %s990_s9, %s990_s9, %s991_s10  }
  0x1b   : > { %p39_p7 = scmp.ge.s32.totalorder %s38_s14, 2  ;;  %s48_s15 = sadd.s32 1, %s975_s20 }
  0x1c   : > { %p55_p8 = scmp.ne.s32.totalorder %s975_s20, %s971_s19  ;;  %p56_p9 = scmp.eq.s32.totalorder %s987_s23, 0 }
  0x1d   : > { %s1259_s14 = smov (%p39_p7, %s38_s14), 0  ;;  %p61_p11 = scmp.ne.s32.totalorder %s971_s19, %s967_s18 }
  0x1e   : > { %1246 = sst [smem:[#allocation21_spill]] %s1259_s14  ;;  %p1082_p10 = por %p56_p9, %p55_p8 }
  0x1f   : > { %s45_s17 = ssub.s32 %s983_s22, %s1259_s14  ;;  %p165_p12 = scmp.eq.s32.totalorder %s1054_s24, 1 }
  0x20   : > { %p46_p13 = scmp.eq.s32.totalorder %s45_s17, 0  ;;  %p1093_p0 = por %p62_p1, %p61_p11 }
  0x21   : > { %p1097_p2 = por %p165_p12, %p55_p8  ;;  %p171_p4 = scmp.eq.s32.totalorder %s616_s13, 1 }
  0x22   : > { %s1102_s27 = scalar_select %p46_p13, %s975_s20, %s48_s15  }
  0x23   : > { %p1104_p5 = por %p171_p4, %p61_p11  ;;  %p677_p7 = scmp.lt.s32.totalorder %s987_s23, 2 }
  0x24   : > { %1250 = sst [smem:[#allocation22_spill]] %s1102_s27  ;;  %s251_s30 = sand.u32 1, %s975_s20  }
  0x25   : > { %s622_s6 = sshll.u32 %s983_s22, 2  ;;  %s621_s7 = sshll.u32 %s251_s30, 2 }
  0x26   : > { %s259_s10 = scalar_lea.hbm %s1230_s0, %s622_s6  ;;  %s255_s12 = scalar_lea.vmem [#allocation2], %s621_s7 }
  0x27   : > { %s261_s11 = sshll.u32 %s259_s10, 4  ;;  %s263_s17 = sshll.u32 %s255_s12, 4  ;;  %s262_s11 = int_to_ptr.hbm [resolvable:$true] %s261_s11  ;;  %s264_s17 = int_to_ptr.vmem [resolvable:$true] %s263_s17 }
  0x28   : > { %p662_p8 = pnand %p677_p7, %p1082_p10  ;;  %s278_s2 = scalar_lea.hbm %s1231_s1, %s622_s6 }
  0x29   : > { %s270_s3 = sand.u32 1, %s987_s23   ;;  %s252_s14 = scalar_lea.sflag [#allocation3], %s251_s30 }
  0x2a   : > { %664 = dma.hbm_to_vmem [thread:$0]  (!%p662_p8), %s262_s11, 64, %s264_s17, %s252_s14  }
  0x2b   : > { %s280_s22 = sshll.u32 %s278_s2, 4  ;;  %s274_s27 = scalar_lea.vmem [#allocation5], %s621_s7  ;;  %s281_s22 = int_to_ptr.hbm [resolvable:$true] %s280_s22 }
  0x2c   : > { %s282_s20 = sshll.u32 %s274_s27, 4  ;;  %s271_s8 = scalar_lea.sflag [#allocation6], %s270_s3  ;;  %s283_s20 = int_to_ptr.vmem [resolvable:$true] %s282_s20 }
  0x2d   : > { %667 = dma.hbm_to_vmem [thread:$0]  (!%p662_p8), %s281_s22, 64, %s283_s20, %s271_s8  }
  0x2e   : > { %291 = sbr.rel (%p1062_p3) target bundleno = 91 (0x5b), region = 36  ;;  %s1123_s16 = sand.u32 (!%p1062_p3), 1, %s971_s19  }
  0x2f   : > { %s1126_s6 = sshll.u32 (!%p1062_p3), %s1123_s16, 2  ;;  %s294_s14 = scalar_lea.sflag (!%p1062_p3), [#allocation3], %s1123_s16 }
  0x30   : > { %s1130_s2 = scalar_lea.vmem (!%p1062_p3), [#allocation2], %s1126_s6 }
  0x33   : > { %942 = dma.done.wait (%p1093_p0), %s294_s14, 64  }
  0x34   : > { %944 = vsyncadd (%p1093_p0), %s294_s14, 4294967232  ;;  %s303_s3 = sand.u32 1, %s1054_s24   ;;  %s1138_s22 = scalar_lea.vmem [#allocation5], %s1126_s6 }
  0x35   : > { %s304_s20 = scalar_lea.sflag [#allocation6], %s303_s3 }
  0x36   : > { %946 = dma.done.wait (%p1093_p0), %s304_s20, 64  }
  0x37   : > { %948 = vsyncadd (%p1093_p0), %s304_s20, 4294967232 }
  0x38   : > { %950 = dma.done.wait (%p62_p1), [#allocation6], 256  }
  0x39   : > { %952 = vsyncadd (%p62_p1), [#allocation6], 4294967040 }
  0x3a   : > { %954 = dma.done.wait (%p62_p1), [#allocation9], 256  }
  0x3b   : > { %956 = vsyncadd (%p62_p1), [#allocation9], 4294967040  ;;  %s634_s28 = sshll.u32 %s979_s21, 2  ;;  %v733_v0 = vld [vmem:[%s1130_s2] ss:$0 sm:$0xff]  ;;  %s347_s10 = scalar_lea.vmem [#allocation10], %s1126_s6 }
  0x3c   : > { %v734_v1 = vld [vmem:[%s1138_s22] ss:$0 sm:$0xff]  ;;  %v359_v2 = vld [vmem:[#allocation7] sm:$0xf]  ;;  %v360_v3 = vld [vmem:[#allocation8] sm:$0xf]  ;;  %s436_s27 = scalar_lea.hbm %s1234_s4, %s634_s28  ;;  %s451_s9 = scalar_lea.hbm %s1235_s5, %s634_s28 }
  0x3d   : > { %v361_v4 = vmul.f32 %v733_v0, %v359_v2  ;;  %v735_v5 = vld [vmem:[%s1130_s2 + $0x1] ss:$0 sm:$0xff]  ;;  %v365_v6 = vmul.f32 %v733_v0, %v360_v3  ;;  %v362_v7 = vmul.f32 %v734_v1, %v360_v3  ;;  %v736_v8 = vld [vmem:[%s1138_s22 + $0x1] ss:$0 sm:$0xff]  ;;  %v374_v9 = vld [vmem:[#allocation7 + $0x4] sm:$0xf]  ;;  %v366_v11 = vmul.f32 %v734_v1, %v359_v2 }
  0x3e   : > { %v376_v10 = vld [vmem:[#allocation8 + $0x4] sm:$0xf]  ;;  %v377_v12 = vmul.f32 %v735_v5, %v374_v9  ;;  %v738_v17 = vld [vmem:[%s1138_s22 + $0x2] ss:$0 sm:$0xff]  ;;  %v390_v18 = vld [vmem:[#allocation7 + $0x8] sm:$0xf]  ;;  %v382_v21 = vmul.f32 %v736_v8, %v374_v9 }
  0x3f   : > { %v737_v13 = vld [vmem:[%s1130_s2 + $0x2] ss:$0 sm:$0xff]  ;;  %v381_v14 = vmul.f32 %v735_v5, %v376_v10  ;;  %v363_v15 = vsub.f32 %v361_v4, %v362_v7  ;;  %v378_v16 = vmul.f32 %v736_v8, %v376_v10  ;;  %v392_v19 = vld [vmem:[#allocation8 + $0x8] sm:$0xf]  ;;  %v367_v20 = vadd.f32 %v366_v11, %v365_v6  ;;  %v739_v23 = vld [vmem:[%s1130_s2 + $0x3] ss:$0 sm:$0xff] }
  0x40   : > { %v393_v22 = vmul.f32 %v737_v13, %v390_v18  ;;  %v397_v24 = vmul.f32 %v737_v13, %v392_v19  ;;  %v394_v26 = vmul.f32 %v738_v17, %v392_v19  ;;  %v740_v27 = vld [vmem:[%s1138_s22 + $0x3] ss:$0 sm:$0xff]  ;;  %v406_v28 = vld [vmem:[#allocation7 + $0xc] sm:$0xf]  ;;  %v398_v31 = vmul.f32 %v738_v17, %v390_v18  ;;  %s1172_s11 = sshll.u32 %s347_s10, 4  ;;  %s354_s12 = scalar_lea.vmem [#allocation11], %s1126_s6  ;;  %s439_s11 = int_to_ptr.vmem [resolvable:$true] %s1172_s11 }
  0x41   : > { %v379_v25 = vsub.f32 %v377_v12, %v378_v16  ;;  %v408_v29 = vld [vmem:[#allocation8 + $0xc] sm:$0xf]  ;;  %v383_v30 = vadd.f32 %v382_v21, %v381_v14  ;;  %v409_v32 = vmul.f32 %v739_v23, %v406_v28  ;;  %s1175_s17 = sshll.u32 %s354_s12, 4  ;;  %v414_v39 = vmul.f32 %v740_v27, %v406_v28  ;;  %s440_s21 = sshll.u32 %s436_s27, 4  ;;  %s454_s17 = int_to_ptr.vmem [resolvable:$true] %s1175_s17  ;;  %s441_s21 = int_to_ptr.hbm [resolvable:$true] %s440_s21 }
  0x42   : > { %v413_v33 = vmul.f32 %v739_v23, %v408_v29  ;;  %v395_v35 = vsub.f32 %v393_v22, %v394_v26  ;;  %v410_v36 = vmul.f32 %v740_v27, %v408_v29  ;;  %v399_v38 = vadd.f32 %v398_v31, %v397_v24  ;;  %s455_s13 = sshll.u32 %s451_s9, 4  ;;  %s420_s15 = scalar_lea.sflag [#allocation4], %s1123_s16  ;;  %s1179_s13 = int_to_ptr.hbm [resolvable:$true] %s455_s13 }
  0x43   : > { %v380_v34 = vadd.f32 %v379_v25, %v363_v15  ;;  %v384_v37 = vadd.f32 %v383_v30, %v367_v20  ;;  %s875_s8 = sshra.s32 %s441_s21, 4  ;;  %s881_s3 = scalar_lea.hbm %s1234_s4, 8  ;;  %s876_s8 = int_to_ptr.hbm [resolvable:$true] %s875_s8 }
  0x44   : > { %v411_v41 = vsub.f32 %v409_v32, %v410_v36  ;;  %v415_v43 = vadd.f32 %v414_v39, %v413_v33  ;;  %s877_s6 = scalar_lea.hbm %s876_s8, 4  ;;  %p882_p10 = scmp.lt.s32.totalorder %s876_s8, %s1234_s4 }
  0x45   : > { %v396_v40 = vadd.f32 %v395_v35, %v380_v34  ;;  %v400_v42 = vadd.f32 %v399_v38, %v384_v37  ;;  %p878_p1 = scmp.ne.s32.totalorder %s876_s8, %s877_s6  ;;  %p883_p11 = scmp.lt.s32.totalorder %s881_s3, %s877_s6 }
  0x47   : > { %v412_v44 = vadd.f32 %v411_v41, %v396_v40  ;;  %v416_v45 = vadd.f32 %v415_v43, %v400_v42  ;;  %p879_p3 = pnand %p878_p1, %p1097_p2  ;;  %p884_p12 = por %p883_p11, %p882_p10 }
  0x49   : > { %417 = vst [vmem:[%s347_s10] sm:$0xf] %v412_v44  ;;  %p880_p9 = pneg %p879_p3 }
  0x4a   : > { %418 = vst [vmem:[%s354_s12] sm:$0xf] %v416_v45 }
  0x4b   : > { %p885_p13 = pnand %p884_p12, %p880_p9 }
  0x4d   : > { %888 = shalt.err (!%p885_p13)
}
  0x4e   : > { %650 = dma.vmem_to_hbm [thread:$0]  (%p1097_p2), %s439_s11, 64, %s441_s21, %s420_s15  }
  0x4f   : > { %s425_s28 = scalar_lea.sflag [#allocation12], %s1123_s16  ;;  %s903_s24 = sshra.s32 %s1179_s13, 4  ;;  %s904_s24 = int_to_ptr.hbm [resolvable:$true] %s903_s24 }
  0x50   : > { %s905_s25 = scalar_lea.hbm %s904_s24, 4  ;;  %s909_s7 = scalar_lea.hbm %s1235_s5, 8 }
  0x51   : > { %p906_p0 = scmp.ne.s32.totalorder %s904_s24, %s905_s25  ;;  %p910_p8 = scmp.lt.s32.totalorder %s904_s24, %s1235_s5 }
  0x52   : > { %p911_p1 = scmp.lt.s32.totalorder %s909_s7, %s905_s25 }
  0x53   : > { %p907_p4 = pnand %p906_p0, %p1097_p2 }
  0x54   : > { %p912_p3 = por %p911_p1, %p910_p8 }
  0x55   : > { %p908_p7 = pneg %p907_p4 }
  0x57   : > { %p913_p9 = pnand %p912_p3, %p908_p7 }
  0x59   : > { %916 = shalt.err (!%p913_p9)
}
  0x5a   : > { %651 = dma.vmem_to_hbm [thread:$0]  (%p1097_p2), %s454_s17, 64, %s1179_s13, %s425_s28  }
  0x5b PF: > { %s467_s16 = sand.u32 1, %s967_s18   ;;  %p669_p10 = pnand %p620_p6, %p1104_p5 }
  0x5c   : > { %s468_s11 = scalar_lea.sflag [#allocation4], %s467_s16 }
  0x5d   : > { %p670_p11 = pneg %p669_p10 }
  0x5f   : > { %958 = dma.done.wait (%p670_p11), %s468_s11, 64  }
  0x60   : > { %960 = vsyncadd (%p670_p11), %s468_s11, 4294967232  ;;  %s478_s12 = scalar_lea.sflag [#allocation12], %s467_s16 }
  0x61   : > { %962 = dma.done.wait (%p670_p11), %s478_s12, 64  }
  0x62   : > { %964 = vsyncadd (%p670_p11), %s478_s12, 4294967232  ;;  %s29_s23 = sadd.s32 1, %s987_s23   ;;  %s1252_s26 = sld [smem:[#allocation19_spill]] }
  0x63   : > { %p26_p12 = scmp.ge.s32.totalorder %s29_s23, 4   ;;  %s1253_s20 = sld [smem:[#allocation22_spill]] }
  0x64   : > { %s1254_s21 = sld [smem:[#allocation20_spill]]  ;;  %s1256_s18 = smov %s971_s19 }
  0x65   : > { %s1255_s22 = sld [smem:[#allocation21_spill]]  ;;  %28 = sbr.rel (!%p26_p12) target bundleno = 14 (0xe), region = 127 }
  0x68   : > { %s1257_s19 = smov %s1252_s26 }
  0x6a   :  { %484 = vsyncpa [#allocation3], 1 }
  0x6b   :  { %486 = vsyncpa [#allocation3 + $0x1], 1 }
  0x6c   :  { %487 = vsyncpa [#allocation6], 1 }
  0x6d   :  { %489 = vsyncpa [#allocation6 + $0x1], 1 }
  0x6e   :  { %490 = vsyncpa [#allocation9], 1 }
  0x6f   :  { %491 = vsyncpa [#allocation4], 1 }
  0x70   :  { %493 = vsyncpa [#allocation4 + $0x1], 1 }
  0x71   :  { %494 = vsyncpa [#allocation12], 1 }
  0x72   :  { %496 = vsyncpa [#allocation12 + $0x1], 1 }

</bundles_post_ra>
